<compile_context>
chip_gen: v6e
topology: v6e:2x2x1
jax: 0.10.0
libtpu: 0.0.40
codegen_flags: <defaults>
</compile_context>

<pallas_src>
import jax
import jax.numpy as jnp
from jax.experimental import pallas as pl
from jax.experimental.pallas import tpu as pltpu

_LANES = 128


def _device_tiling():
    """Per-generation (tile_rows, num_cores) defaults."""
    try:
        kind = jax.devices()[0].device_kind.lower()
    except Exception:
        kind = ""
    if "v7" in kind:
        return 8192, 2            # 4 MiB f32 tiles; 2 TensorCores per chip
    if "v6" in kind or "trillium" in kind:
        return 4096, 1            # 2 MiB f32 tiles; single TensorCore
    if "v5 lite" in kind or "v5e" in kind:
        return 2048, 1            # stay well under v5e's 16 MiB scoped VMEM
    return 2048, 1


def _row_align(dtype):
    itemsize = jnp.dtype(dtype).itemsize
    return 8 * max(1, 4 // itemsize)     # f32 -> 8, bf16 -> 16, int8/fp8 -> 32


def weighted_mse_loss(pred, target, weights, *, tile_rows=None, num_cores=None,
                      use_core_parallel=False):
    """Pallas implementation of WeightedMSELoss.forward.

    pred, target: [N, D] float (any float dtype; accumulation is f32)
    weights:      [D]    float
    returns: scalar float32 mean of (pred - target)^2 * weights
    """
    assert pred.shape == target.shape
    n, d = pred.shape
    weights = jnp.asarray(weights, dtype=jnp.float32)
    assert weights.shape == (d,)
    # Lane-replicated weights rely on the weight period dividing 128.
    # TODO(synk): for D not dividing 128, build a full per-element weight plane.
    assert _LANES % d == 0

    total = n * d

    if tile_rows is None or num_cores is None:
        dev_rows, dev_cores = _device_tiling()
        tile_rows = dev_rows if tile_rows is None else tile_rows
        num_cores = dev_cores if num_cores is None else num_cores

    # ---- lane-dense (rows, 128) view -----------------------------------
    row_align = max(_row_align(pred.dtype), _row_align(target.dtype))
    align_elems = row_align * _LANES
    padded_total = -(-total // align_elems) * align_elems
    rows_aligned = padded_total // _LANES            # multiple of row_align

    tile_rows = min(int(tile_rows), rows_aligned)
    tile_rows = max(row_align, (tile_rows // row_align) * row_align)
    num_blocks = -(-rows_aligned // tile_rows)
    num_cores = max(1, min(int(num_cores), num_blocks))
    steps_per_core = -(-num_blocks // num_cores)
    grid_blocks = num_cores * steps_per_core
    acc_rows = 32 if tile_rows % 32 == 0 else row_align
    needs_mask = (grid_blocks * tile_rows != rows_aligned)

    def to_lane_dense(x):
        x = x.reshape(-1)
        if padded_total != total:
            # TODO(synk): replace this (full-array HBM copy) with an in-kernel
            # element-count mask for totals not divisible by row_align*128.
            # When total is aligned this branch is skipped and the reshape is
            # metadata-only (kernel reads the original buffers directly).
            x = jnp.pad(x, (0, padded_total - total))
        return x.reshape(rows_aligned, _LANES)

    pred2d = to_lane_dense(pred)
    target2d = to_lane_dense(target)

    # ---- kernel ---------------------------------------------------------
    def kernel(pred_ref, target_ref, out_ref):
        i = pl.program_id(1)

        @pl.when(i == 0)
        def _():
            out_ref[...] = jnp.zeros_like(out_ref)

        # Load in native dtype, cast to f32 immediately (v5e VPU has no bf16).
        p = pred_ref[...].astype(jnp.float32)
        t = target_ref[...].astype(jnp.float32)
        diff = p - t
        sq = diff * diff
        if needs_mask:
            # Mask ragged-tail rows of the partial edge block and any clamped
            # duplicate grid steps (unclamped start >= rows_aligned).
            start = (pl.program_id(0) * steps_per_core + i) * tile_rows
            row_ids = start + jax.lax.broadcasted_iota(
                jnp.int32, (tile_rows, 1), 0)
            sq = jnp.where(row_ids < rows_aligned, sq, 0.0)
        # Independent per-vreg accumulate chains; weights folded in later.
        out_ref[...] += jnp.sum(sq.reshape(-1, acc_rows, _LANES), axis=0)

    # ---- specs / grid ---------------------------------------------------
    if grid_blocks > num_blocks:
        def in_index(c, i):
            return (jnp.minimum(c * steps_per_core + i, num_blocks - 1), 0)
    else:
        def in_index(c, i):
            return (c * steps_per_core + i, 0)

    in_spec = pl.BlockSpec((tile_rows, _LANES), in_index)
    out_spec = pl.BlockSpec((None, acc_rows, _LANES), lambda c, i: (c, 0, 0))

    itemsizes = (jnp.dtype(pred.dtype).itemsize,
                 jnp.dtype(target.dtype).itemsize)
    cost = pl.CostEstimate(
        flops=3 * total,
        transcendentals=0,
        bytes_accessed=total * sum(itemsizes) + num_cores * acc_rows * _LANES * 4)

    # Double-buffered input footprint; raise scoped VMEM only when needed.
    tile_bytes = tile_rows * _LANES * max(itemsizes)
    footprint = 2 * 2 * tile_bytes
    vmem_limit = footprint + (8 << 20) if footprint > (12 << 20) else None

    if use_core_parallel:
        # TODO(synk): verify on v7x whether plain PARALLEL shards the leading
        # axis across both TensorCores; if not, enable this path.
        semantics = (pltpu.CORE_PARALLEL, pltpu.ARBITRARY)
    else:
        semantics = (pltpu.PARALLEL, pltpu.ARBITRARY)

    partials = pl.pallas_call(
        kernel,
        out_shape=jax.ShapeDtypeStruct((num_cores, acc_rows, _LANES),
                                       jnp.float32),
        grid_spec=pltpu.PrefetchScalarGridSpec(
            num_scalar_prefetch=0,
            grid=(num_cores, steps_per_core),
            in_specs=[in_spec, in_spec],
            out_specs=out_spec),
        compiler_params=pltpu.CompilerParams(
            dimension_semantics=semantics,
            vmem_limit_bytes=vmem_limit),
        cost_estimate=cost,
    )(pred2d, target2d)

    # Tiny epilogue in plain XLA: per-lane weighting + mean over N*D elements.
    # (Row-major flatten + D | 128 guarantees lane % D == output index.)
    w_row = jnp.tile(weights, _LANES // d)            # (128,)
    per_lane = jnp.sum(partials, axis=(0, 1))         # (128,) f32
    return jnp.sum(per_lane * w_row) / jnp.float32(total)


def weighted_mse_loss_ref(pred, target, weights):
    p = pred.astype(jnp.float32)
    t = target.astype(jnp.float32)
    w = weights.astype(jnp.float32).reshape(1, -1)
    return jnp.mean((p - t) ** 2 * w)


if __name__ == "__main__":
    key = jax.random.PRNGKey(0)
    k1, k2, k3, k4, k5, k6 = jax.random.split(key, 6)
    weights = jnp.array([1.0, 10.0], dtype=jnp.float32)  # module default

    # 1) Tiny module-default shape: batch of 16 predictions, 2 outputs.
    pred = jax.random.normal(k1, (16, 2), dtype=jnp.float32)
    target = jax.random.normal(k2, (16, 2), dtype=jnp.float32)
    loss = jax.block_until_ready(weighted_mse_loss(pred, target, weights))
    ref = weighted_mse_loss_ref(pred, target, weights)
    assert jnp.allclose(loss, ref, rtol=1e-5, atol=1e-6), (loss, ref)

    # 2) Exercise the in-kernel ragged-tail mask + clamped duplicate grid step
    #    (pad-free: total = 5120 is already a multiple of 1024).
    pred = jax.random.normal(k3, (2560, 2), dtype=jnp.float32)
    target = jax.random.normal(k4, (2560, 2), dtype=jnp.float32)
    loss = jax.block_until_ready(
        weighted_mse_loss(pred, target, weights, tile_rows=16, num_cores=2))
    ref = weighted_mse_loss_ref(pred, target, weights)
    assert jnp.allclose(loss, ref, rtol=1e-5, atol=1e-6), (loss, ref)

    # 3) bf16 inputs on the pad-free (metadata-only reshape) path.
    pred = jax.random.normal(k5, (1024, 2), dtype=jnp.bfloat16)
    target = jax.random.normal(k6, (1024, 2), dtype=jnp.bfloat16)
    loss = jax.block_until_ready(weighted_mse_loss(pred, target, weights))
    ref = weighted_mse_loss_ref(pred, target, weights)
    assert jnp.allclose(loss, ref, rtol=1e-4, atol=1e-6), (loss, ref)

    print("KERNEL_OK")
</pallas_src>

<mosaic_0001>
module attributes {stable_mosaic.version = 11 : i64} {
  func.func @kernel(%arg0: i32, %arg1: i32, %arg2: memref<8x128xf32, #tpu.memory_space<vmem>>, %arg3: memref<8x128xf32, #tpu.memory_space<vmem>>, %arg4: memref<1x8x128xf32, #tpu.memory_space<vmem>>) attributes {dimension_semantics = [#tpu.dimension_semantics<parallel>, #tpu.dimension_semantics<arbitrary>], iteration_bounds = array<i64: 1, 1>, scalar_prefetch = 0 : i64, scratch_operands = 0 : i64, tpu.core_type = #tpu.core_type<tc>, window_params = [{transform_indices = @transform_0, window_bounds = array<i64: 8, 128>}, {transform_indices = @transform_1, window_bounds = array<i64: 8, 128>}, {transform_indices = @transform_2, window_bounds = array<i64: 1, 8, 128>}]} {
    %c0_i32 = arith.constant 0 : i32
    %0 = arith.cmpi eq, %arg1, %c0_i32 : i32
    %1 = arith.extui %0 : i1 to i32
    %c0_i32_0 = arith.constant 0 : i32
    %2 = arith.cmpi ne, %1, %c0_i32_0 : i32
    scf.if %2 {
      %cst_10 = arith.constant 0.000000e+00 : f32
      %15 = vector.broadcast %cst_10 : f32 to vector<8x128xf32>
      %c0_11 = arith.constant 0 : index
      %c0_12 = arith.constant 0 : index
      %c0_13 = arith.constant 0 : index
      %16 = vector.load %arg4[%c0_11, %c0_12, %c0_13] : memref<1x8x128xf32, #tpu.memory_space<vmem>>, vector<1x8x128xf32>
      %17 = vector.shape_cast %16 : vector<1x8x128xf32> to vector<8x128xf32>
      %18 = vector.shape_cast %15 : vector<8x128xf32> to vector<1x8x128xf32>
      tpu.vector_store %arg4[%c0_11, %c0_12, %c0_13], %18 {strides = array<i32>} : memref<1x8x128xf32, #tpu.memory_space<vmem>>, vector<1x8x128xf32>,
    } else {
    }
    %c0 = arith.constant 0 : index
    %c0_1 = arith.constant 0 : index
    %3 = vector.load %arg2[%c0, %c0_1] : memref<8x128xf32, #tpu.memory_space<vmem>>, vector<8x128xf32>
    %c0_2 = arith.constant 0 : index
    %c0_3 = arith.constant 0 : index
    %4 = vector.load %arg3[%c0_2, %c0_3] : memref<8x128xf32, #tpu.memory_space<vmem>>, vector<8x128xf32>
    %5 = arith.subf %3, %4 : vector<8x128xf32>
    %6 = arith.mulf %5, %5 : vector<8x128xf32>
    %c0_4 = arith.constant 0 : index
    %c0_5 = arith.constant 0 : index
    %c0_6 = arith.constant 0 : index
    %7 = vector.load %arg4[%c0_4, %c0_5, %c0_6] : memref<1x8x128xf32, #tpu.memory_space<vmem>>, vector<1x8x128xf32>
    %8 = vector.shape_cast %7 : vector<1x8x128xf32> to vector<8x128xf32>
    %9 = vector.shape_cast %6 : vector<8x128xf32> to vector<1x8x128xf32>
    %cst = arith.constant dense<0.000000e+00> : vector<8x128xf32>
    %10 = vector.multi_reduction <add>, %9, %cst [0] : vector<1x8x128xf32> to vector<8x128xf32>
    %11 = arith.addf %8, %10 : vector<8x128xf32>
    %c0_7 = arith.constant 0 : index
    %c0_8 = arith.constant 0 : index
    %c0_9 = arith.constant 0 : index
    %12 = vector.load %arg4[%c0_7, %c0_8, %c0_9] : memref<1x8x128xf32, #tpu.memory_space<vmem>>, vector<1x8x128xf32>
    %13 = vector.shape_cast %12 : vector<1x8x128xf32> to vector<8x128xf32>
    %14 = vector.shape_cast %11 : vector<8x128xf32> to vector<1x8x128xf32>
    tpu.vector_store %arg4[%c0_7, %c0_8, %c0_9], %14 {strides = array<i32>} : memref<1x8x128xf32, #tpu.memory_space<vmem>>, vector<1x8x128xf32>,
    return
  }
  func.func @transform_0(%arg0: i32, %arg1: i32) -> (i32, i32) {
    %c1_i32 = arith.constant 1 : i32
    %0 = arith.muli %arg0, %c1_i32 : i32
    %1 = arith.addi %0, %arg1 : i32
    %c0_i32 = arith.constant 0 : i32
    %c0_i32_0 = arith.constant 0 : i32
    return %1, %c0_i32 : i32, i32
  }
  func.func @transform_1(%arg0: i32, %arg1: i32) -> (i32, i32) {
    %c1_i32 = arith.constant 1 : i32
    %0 = arith.muli %arg0, %c1_i32 : i32
    %1 = arith.addi %0, %arg1 : i32
    %c0_i32 = arith.constant 0 : i32
    %c0_i32_0 = arith.constant 0 : i32
    return %1, %c0_i32 : i32, i32
  }
  func.func @transform_2(%arg0: i32, %arg1: i32) -> (i32, i32, i32) {
    %c0_i32 = arith.constant 0 : i32
    %c0_i32_0 = arith.constant 0 : i32
    %c0_i32_1 = arith.constant 0 : i32
    return %arg0, %c0_i32, %c0_i32_0 : i32, i32, i32
  }
}

</mosaic_0001>

<bundles_post_ra>
// kernel: tpu_custom_call.1
= control target key start
LH: loop header
LB: loop body
LE: loop exit
PB: predicated region body
PF: predicated region fallthrough
CT: control target
= control target key end

     0   :  { %7 = vsyncpa [#allocation3], 0  ;;  %s170_s0 = inlined_call_operand.hbm [shape: f32[8,128], index: 0, kind: input, shape index: {}]   ;;  %s171_s1 = inlined_call_operand.hbm [shape: f32[8,128], index: 1, kind: input, shape index: {}]   ;;  %s172_s2 = inlined_call_operand.hbm [shape: f32[1,8,128], index: 2, kind: output, shape index: {}]  }
   0x1   :  { %8 = vsyncpa [#allocation6], 0 }
   0x2   :  { %9 = vsyncpa [#allocation4], 0  ;;  %s143_s9 = smov [#allocation2]   ;;  %s144_s11 = smov [#allocation5]  }
   0x3   :  { %s19_s10 = sshll.u32 %s143_s9, 4  ;;  %s32_s12 = sshll.u32 %s144_s11, 4  ;;  %s20_s10 = int_to_ptr.vmem [resolvable:$true] %s19_s10  ;;  %s33_s12 = int_to_ptr.vmem [resolvable:$true] %s32_s12 }
   0x4   :  { %s85_s13 = scalar_lea.vmem %s20_s10, 128  ;;  %p90_p1 = scmp.lt.s32.totalorder %s20_s10, %s20_s10 }
   0x5   :  { %p86_p0 = scmp.ne.s32.totalorder %s20_s10, %s85_s13  ;;  %p91_p2 = scmp.lt.s32.totalorder %s85_s13, %s85_s13 }
   0x7   :  { %p92_p3 = por %p91_p2, %p90_p1 }
   0x9   :  { %p93_p4 = pnand %p92_p3, %p86_p0 }
   0xb   :  { %96 = shalt.err (!%p93_p4)
}
   0xc   :  { %22 = dma.hbm_to_vmem [thread:$0]  %s170_s0, 128, %s20_s10, [#allocation3]  }
   0xd   :  { %s105_s16 = scalar_lea.vmem %s33_s12, 128  ;;  %p110_p6 = scmp.lt.s32.totalorder %s33_s12, %s33_s12 }
   0xe   :  { %p106_p5 = scmp.ne.s32.totalorder %s33_s12, %s105_s16  ;;  %p111_p7 = scmp.lt.s32.totalorder %s105_s16, %s105_s16 }
  0x10   :  { %p112_p8 = por %p111_p7, %p110_p6 }
  0x12   :  { %p113_p9 = pnand %p112_p8, %p106_p5 }
  0x14   :  { %116 = shalt.err (!%p113_p9)
}
  0x15   :  { %35 = dma.hbm_to_vmem [thread:$0]  %s171_s1, 128, %s33_s12, [#allocation6]  }
  0x16   :  { %137 = dma.done.wait [#allocation3], 128  }
  0x17   :  { %138 = vsyncadd [#allocation3], 4294967168 }
  0x18   :  { %139 = dma.done.wait [#allocation6], 128  }
  0x19   :  { %140 = vsyncadd [#allocation6], 4294967168  ;;  %v49_v0 = vld [vmem:[#allocation2] sm:$0xff]  ;;  %v50_v1 = vld [vmem:[#allocation5] sm:$0xff]  ;;  %s145_s19 = smov [#allocation7]  }
  0x1a   :  { %v51_v2 = vsub.f32 %v49_v0, %v50_v1  ;;  %s63_s0 = sshll.u32 %s145_s19, 4  ;;  %s64_s0 = int_to_ptr.vmem [resolvable:$true] %s63_s0 }
  0x1b   :  { %s117_s20 = scalar_lea.vmem %s64_s0, 128  ;;  %p122_p11 = scmp.lt.s32.totalorder %s64_s0, %s64_s0 }
  0x1c   :  { %v52_v3 = vmul.f32 %v51_v2, %v51_v2  ;;  %p118_p10 = scmp.ne.s32.totalorder %s64_s0, %s117_s20  ;;  %p123_p12 = scmp.lt.s32.totalorder %s117_s20, %s117_s20 }
  0x1e   :  { %56 = vst [vmem:[#allocation7] sm:$0xff] %v52_v3  ;;  %p124_p13 = por %p123_p12, %p122_p11 }
  0x20   :  { %p125_p0 = pnand %p124_p13, %p118_p10 }
  0x22   :  { %128 = shalt.err (!%p125_p0)
}
  0x23   :  { %66 = dma.vmem_to_hbm [thread:$0]  %s64_s0, 128, %s172_s2, [#allocation4]  }
  0x24   :  { %141 = dma.done.wait [#allocation4], 128  }
  0x25   :  { %142 = vsyncadd [#allocation4], 4294967168 }
  0x26   :  { %70 = vsyncpa [#allocation3], 1 }
  0x27   :  { %71 = vsyncpa [#allocation6], 1 }
  0x28   :  { %72 = vsyncpa [#allocation4], 1 }

</bundles_post_ra>
